<compile_context>
chip_gen: v5e
topology: v5e:2x2
jax: 0.10.0
libtpu: 0.0.40
codegen_flags: <defaults>
</compile_context>

<pallas_src>
import functools

import numpy as np
import jax
import jax.numpy as jnp
from jax.experimental import pallas as pl
from jax.experimental.pallas import tpu as pltpu


_LANE = 128                    # vreg lane width
_MAX_COLS = 2048               # widest lane dim considered (multiple of 128)
_BLOCK_TARGET_BYTES = 4 << 20  # ~4 MiB/block: in+out double-buffered ~= 16 MiB
_VMEM_LIMIT_BYTES = 32 << 20   # raise v5e's 16 MiB scoped default; <= 64 MiB v7x physical


# ----------------------------- Pallas kernel --------------------------------

def _copy_kernel(x_ref, o_ref):
    o_ref[...] = x_ref[...]


# ------------------------------ helpers --------------------------------------

def _sublane_for(dtype):
    """Packed sublane granularity: 8 for 32-bit, 16 for 16-bit, 32 for 8-bit."""
    itemsize = np.dtype(dtype).itemsize
    return {4: 8, 2: 16, 1: 32}.get(itemsize, 8)


def _resolve_size(in_shape, size):
    """Replicate torch.Tensor.view(size) shape resolution (a single -1 allowed)."""
    size = tuple(int(s) for s in size)
    n = 1
    for d in in_shape:
        n *= int(d)
    if size.count(-1) > 1:
        raise ValueError("only one dimension can be inferred")
    if -1 in size:
        idx = size.index(-1)
        known = 1
        for i, s in enumerate(size):
            if i != idx:
                known *= s
        if known == 0 or n % known != 0:
            raise ValueError(f"shape {size} is invalid for input of size {n}")
        size = size[:idx] + (n // known,) + size[idx + 1:]
    total = 1
    for s in size:
        total *= s
    if total != n:
        raise ValueError(f"shape {size} is invalid for input of size {n}")
    return size


def _pick_layout(n, dtype):
    """Factor a flat length-n buffer into (rows, cols, tile_rows).

    Returns None when there is no clean (sublane*128)-aligned factorization;
    the caller then skips the copy (the view is metadata-only anyway).
    """
    dtype = np.dtype(dtype)
    itemsize = dtype.itemsize
    sub = _sublane_for(dtype)
    if n == 0 or n % (sub * _LANE) != 0:
        return None

    # Lane dimension: widest multiple of 128 (<= _MAX_COLS) dividing n that
    # keeps the row count tileable (multiple of `sub`) or small enough for a
    # single full-array block.  Wide, lane-dense output slabs -> unmasked vst
    # and few, large DMA descriptors.
    cols = _LANE
    c = _MAX_COLS
    while c >= _LANE:
        if n % c == 0:
            r = n // c
            if r % sub == 0 or r * c * itemsize <= _BLOCK_TARGET_BYTES:
                cols = c
                break
        c //= 2
    rows = n // cols

    if rows % sub != 0:
        # Only reachable when the whole array fits one small block
        # (block dims == full array dims, which is always a legal block).
        return rows, cols, rows

    # Row tile: as close to the multi-MiB block target as possible while
    # dividing `rows` exactly (no ragged tail -> no pad/slice HBM passes).
    target_rows = max(sub, (_BLOCK_TARGET_BYTES // (cols * itemsize)) // sub * sub)
    if rows <= target_rows:
        return rows, cols, rows
    t = target_rows
    while rows % t != 0:   # terminates: rows % sub == 0
        t -= sub
    return rows, cols, t


@functools.lru_cache(maxsize=None)
def _build_copy(rows, cols, tile_rows, dtype):
    """Build (and cache) the jitted, input-donating tiled copy for one layout."""
    dtype = np.dtype(dtype)
    total_bytes = rows * cols * dtype.itemsize
    grid = (rows // tile_rows,)
    call = pl.pallas_call(
        _copy_kernel,
        out_shape=jax.ShapeDtypeStruct((rows, cols), dtype),
        grid=grid,
        in_specs=[pl.BlockSpec((tile_rows, cols), lambda i: (i, 0))],
        out_specs=pl.BlockSpec((tile_rows, cols), lambda i: (i, 0)),
        # Output reuses the (donated) input HBM buffer: no second N-byte alloc
        # for a pure pass-through.  Per-tile read completes before the write.
        input_output_aliases={0: 0},
        cost_estimate=pl.CostEstimate(flops=0, transcendentals=0,
                                      bytes_accessed=2 * total_bytes),
        compiler_params=pltpu.CompilerParams(
            # Row tiles shard across the two TensorCores on v7x; serial-loop
            # no-op on v5e/v6e.
            dimension_semantics=("parallel",),
            vmem_limit_bytes=_VMEM_LIMIT_BYTES,
        ),
    )
    return jax.jit(call, donate_argnums=(0,))


def _tiled_copy_flat(flat):
    """Move a flat 1-D array through a tiled, lane-dense Pallas copy kernel."""
    n = flat.shape[0]
    layout = _pick_layout(n, flat.dtype)
    if layout is None:
        # Ragged size: the view is metadata-only, so skip the copy rather than
        # paying pad + slice HBM round-trips.
        # TODO(synk): if a kernel pass were mandatory for ragged sizes, handle
        # the tail as a final partial block with a masked pltpu.store.
        return flat
    rows, cols, tile_rows = layout
    copy = _build_copy(rows, cols, tile_rows, np.dtype(flat.dtype))
    out2d = copy(flat.reshape(rows, cols))
    return out2d.reshape(n)


# ------------------------------ wrapper --------------------------------------

def pallas_view(x, size, *, force_copy=True):
    """Pallas equivalent of `tensor.view(size)` for a (contiguous) array.

    A contiguous view is metadata-only; with force_copy=False this is just
    jnp.reshape (the honest zero-cost path).  force_copy=True routes the data
    through the tiled identity-copy kernel so the Pallas path is exercised.
    """
    out_shape = _resolve_size(x.shape, size)
    if not force_copy:
        return jnp.reshape(x, out_shape)
    flat = jnp.reshape(x, (-1,))            # metadata-only on a contiguous array
    out_flat = _tiled_copy_flat(flat)
    return jnp.reshape(out_flat, out_shape)  # metadata-only
    # TODO(synk): torch .view() errors on non-contiguous tensors; JAX arrays
    # are always logically contiguous, so that failure mode has no equivalent.


class View:
    """Mirror of the nn.Module API."""

    def __init__(self, size):
        self.size = size

    def __call__(self, tensor):
        return pallas_view(tensor, self.size)

    forward = __call__


# ------------------------------- main ----------------------------------------

if __name__ == "__main__":
    key = jax.random.PRNGKey(0)
    k1, k2, k3 = jax.random.split(key, 3)

    # Small shape consistent with typical View usage (flatten conv features).
    x = jax.random.normal(k1, (2, 4, 16, 16), jnp.float32)
    y = View((2, -1))(x)
    jax.block_until_ready(y)
    assert y.shape == (2, 4 * 16 * 16)
    assert bool(jnp.array_equal(y, jnp.reshape(x, (2, -1))))

    # bf16 input exercises the dtype-aware sublane handling (16-row packing).
    xb = jax.random.normal(k2, (2, 8, 16, 16), jnp.bfloat16)
    yb = View((-1, 256))(xb)
    jax.block_until_ready(yb)
    assert yb.shape == (16, 256)
    assert bool(jnp.array_equal(yb, jnp.reshape(xb, (-1, 256))))

    # Larger input exercises the multi-tile (4 MiB/block), megacore-parallel path.
    x2 = jax.random.normal(k3, (8, 64, 64, 64), jnp.float32)  # 8 MiB -> 2 row tiles
    y2 = View((-1, 4096))(x2)
    jax.block_until_ready(y2)
    assert y2.shape == (512, 4096)
    assert bool(jnp.array_equal(y2, jnp.reshape(x2, (-1, 4096))))

    print("KERNEL_OK")
</pallas_src>

<mosaic_0001>
module attributes {stable_mosaic.version = 11 : i64} {
  func.func @_copy_kernel(%arg0: i32, %arg1: memref<1x2048xf32, #tpu.memory_space<vmem>>, %arg2: memref<1x2048xf32, #tpu.memory_space<vmem>>) attributes {dimension_semantics = [#tpu.dimension_semantics<parallel>], iteration_bounds = array<i64: 1>, scalar_prefetch = 0 : i64, scratch_operands = 0 : i64, tpu.core_type = #tpu.core_type<tc>, window_params = [{transform_indices = @transform_0, window_bounds = array<i64: 1, 2048>}, {transform_indices = @transform_1, window_bounds = array<i64: 1, 2048>}]} {
    %c0 = arith.constant 0 : index
    %c0_0 = arith.constant 0 : index
    %0 = vector.load %arg1[%c0, %c0_0] : memref<1x2048xf32, #tpu.memory_space<vmem>>, vector<1x2048xf32>
    %c0_1 = arith.constant 0 : index
    %c0_2 = arith.constant 0 : index
    %1 = vector.load %arg2[%c0_1, %c0_2] : memref<1x2048xf32, #tpu.memory_space<vmem>>, vector<1x2048xf32>
    tpu.vector_store %arg2[%c0_1, %c0_2], %0 {strides = array<i32>} : memref<1x2048xf32, #tpu.memory_space<vmem>>, vector<1x2048xf32>,
    return
  }
  func.func @transform_0(%arg0: i32) -> (i32, i32) {
    %c0_i32 = arith.constant 0 : i32
    %c0_i32_0 = arith.constant 0 : i32
    return %arg0, %c0_i32 : i32, i32
  }
  func.func @transform_1(%arg0: i32) -> (i32, i32) {
    %c0_i32 = arith.constant 0 : i32
    %c0_i32_0 = arith.constant 0 : i32
    return %arg0, %c0_i32 : i32, i32
  }
}

</mosaic_0001>

<bundles_post_ra>
// kernel: tpu_custom_call.1
= control target key start
LH: loop header
LB: loop body
LE: loop exit
PB: predicated region body
PF: predicated region fallthrough
CT: control target
= control target key end

     0   :  { %6 = vsyncpa [#allocation3], 0  ;;  %s116_s0 = inlined_call_operand.hbm [shape: f32[1,2048], index: 0, kind: input, shape index: {}, may-alias: {0,1}]   ;;  %s117_s1 = inlined_call_operand.hbm [shape: f32[1,2048], index: 1, kind: output, shape index: {}, may-alias: {0,1}]  }
   0x1   :  { %7 = vsyncpa [#allocation4], 0  ;;  %s13_s8 = sshll.u32 %s116_s0, 4  ;;  %s98_s9 = smov [#allocation2]   ;;  %s14_s8 = int_to_ptr.hbm [resolvable:$true] %s13_s8 }
   0x2   :  { %s15_s10 = sshll.u32 %s98_s9, 4  ;;  %s16_s10 = int_to_ptr.vmem [resolvable:$true] %s15_s10 }
   0x3   :  { %18 = dma.hbm_to_vmem [thread:$0]  %s14_s8, 256, %s16_s10, [#allocation3]  }
   0x4   :  { %94 = dma.done.wait [#allocation3], 256  }
   0x5   :  { %95 = vsyncadd [#allocation3], 4294967040  ;;  %s99_s11 = smov [#allocation5]   ;;  %s34_s15 = sshll.u32 %s117_s1, 4  ;;  %v23_v0 = vld [vmem:[#allocation2] sm:$0xff]  ;;  %v24_v1 = vld [vmem:[#allocation2 + $0x8] sm:$0xff]  ;;  %s35_s15 = int_to_ptr.hbm [resolvable:$true] %s34_s15 }
   0x6   :  { %s32_s12 = sshll.u32 %s99_s11, 4  ;;  %25 = vst [vmem:[#allocation5] sm:$0xff] %v23_v0  ;;  %s33_s12 = int_to_ptr.vmem [resolvable:$true] %s32_s12 }
   0x7   :  { %26 = vst [vmem:[#allocation5 + $0x8] sm:$0xff] %v24_v1 }
   0x8   :  { %37 = dma.vmem_to_hbm [thread:$0]  %s33_s12, 256, %s35_s15, [#allocation4]  }
   0x9   :  { %96 = dma.done.wait [#allocation4], 256  }
   0xa   :  { %97 = vsyncadd [#allocation4], 4294967040 }
   0xb   :  { %42 = vsyncpa [#allocation3], 1 }
   0xc   :  { %43 = vsyncpa [#allocation4], 1 }

</bundles_post_ra>
